<compile_context>
chip_gen: v7x
topology: tpu7x:2x2x1
jax: 0.10.0
libtpu: 0.0.40
codegen_flags: <defaults>
</compile_context>

<pallas_src>
import functools

import jax
import jax.numpy as jnp
from jax import lax
from jax.experimental import pallas as pl
from jax.experimental.pallas import tpu as pltpu

EPS_CLAMP = 0.01     # torch.clamp(squared_mean - mean**2, min=0.01)
SUBLANE = 8


def _round_up(v, m):
    return (v + m - 1) // m * m


def _mlp_stats_kernel(x_ref, w1_ref, b1_ref, w2_ref, b2_ref,
                      out_ref, bsum_ref, bsq_ref, *, batch, tm):
    """One batch tile: y = relu(x @ w1_eff + b1_eff) @ w2 + b2, plus partial sums of x, x^2."""
    x = x_ref[...]                                   # (TM, D) f32, unnormalized (BN folded into w1/b1)

    if batch % tm != 0:
        # Last tile extends past the real batch: zero the out-of-range rows so the
        # partial sums are exact (OOB output-row writes are dropped by Pallas anyway).
        rows = pl.program_id(0) * tm + lax.broadcasted_iota(jnp.int32, x.shape, 0)
        x = jnp.where(rows < batch, x, 0.0)

    h = jnp.dot(x.astype(w1_ref.dtype), w1_ref[...],
                preferred_element_type=jnp.float32) + b1_ref[...]
    h = jnp.maximum(h, 0.0)
    y = jnp.dot(h.astype(w2_ref.dtype), w2_ref[...],
                preferred_element_type=jnp.float32) + b2_ref[...]
    out_ref[...] = y.astype(out_ref.dtype)

    # Per-tile partial sums of the UNnormalized input (grid-safe running statistics;
    # reduced and divided by the true batch size in the wrapper).
    bsum_ref[...] = jnp.sum(x, axis=0, keepdims=True).reshape(bsum_ref.shape)
    bsq_ref[...] = jnp.sum(x * x, axis=0, keepdims=True).reshape(bsq_ref.shape)


def normalized_mlp_forward(x, state, params, *, mm_dtype=jnp.bfloat16, batch_tile=1024):
    """Returns (output, new_state). state = {'count','mean','sq_mean'} (functional buffers)."""
    B, D = x.shape
    H = params["w1"].shape[1]
    O = params["w2"].shape[1]

    # ---- fold CustomBN into the first Linear (once per call; weights tiny vs streamed x) ----
    mean = state["mean"]                                        # (1, D)
    var = jnp.maximum(state["sq_mean"] - mean * mean, EPS_CLAMP)
    inv_std = lax.rsqrt(var)                                    # rsqrt instead of sqrt + divide
    w1_eff = (params["w1"] * inv_std.T).astype(mm_dtype)        # (D, H) input-feature column scale
    b1_eff = (params["b1"] - (mean * inv_std) @ params["w1"]).astype(jnp.float32)   # (1, H)
    w2 = params["w2"].astype(mm_dtype)
    b2 = params["b2"].astype(jnp.float32)
    xf = x.astype(jnp.float32)                                  # stats need f32 accuracy

    # ---- batch tiling: multiple of 8, >= 2 grid steps when possible (v7x megacore) ----
    batch_tile = max(SUBLANE, _round_up(int(batch_tile), SUBLANE))
    tiles_target = max(2, pl.cdiv(B, batch_tile))
    TM = max(SUBLANE, min(batch_tile, _round_up(pl.cdiv(B, tiles_target), SUBLANE)))
    num_tiles = pl.cdiv(B, TM)

    itemsize = jnp.dtype(mm_dtype).itemsize
    # Rough VMEM budget: double-buffered streams + resident weights + live temps, 2x headroom,
    # clamped to the physical per-TC VMEM (v7x: 64 MiB) minus headroom for Mosaic scratch.
    tile_bytes = (2 * TM * D * 4 + 2 * TM * O * 4 + 4 * D * 4
                  + 2 * (D * H + H * O) * itemsize + 2 * (H + O) * 4
                  + TM * (D * itemsize + H * (4 + itemsize) + O * 4))
    try:
        phys_vmem = int(pltpu.get_tpu_info().vmem_capacity_bytes)
    except Exception:
        phys_vmem = 64 * 2 ** 20          # conservative: smallest per-TC VMEM (v7x)
    vmem_limit = int(min(phys_vmem - 8 * 2 ** 20, max(32 * 2 ** 20, 2 * tile_bytes)))

    cost = pl.CostEstimate(
        flops=2 * B * (D * H + H * O),
        transcendentals=0,
        bytes_accessed=(4 * (B * D + B * O + 2 * num_tiles * D + H + O)
                        + itemsize * (D * H + H * O)),
    )

    kernel = functools.partial(_mlp_stats_kernel, batch=B, tm=TM)

    out, psum, psq = pl.pallas_call(
        kernel,
        grid=(num_tiles,),
        in_specs=[
            pl.BlockSpec((TM, D), lambda i: (i, 0)),        # x: streamed batch tiles (D = full dim)
            pl.BlockSpec((D, H), lambda i: (0, 0)),         # w1_eff: resident
            pl.BlockSpec((1, H), lambda i: (0, 0)),         # b1_eff: resident
            pl.BlockSpec((H, O), lambda i: (0, 0)),         # w2:     resident
            pl.BlockSpec((1, O), lambda i: (0, 0)),         # b2:     resident
        ],
        out_specs=(
            pl.BlockSpec((TM, O), lambda i: (i, 0)),        # y (no lane padding; OOB rows dropped)
            # Partial sums kept 3D so the last-two block dims equal the full array dims
            # (exempt from the (8,128) rule even for tiny D).
            pl.BlockSpec((1, 1, D), lambda i: (i, 0, 0)),   # per-tile sum(x)
            pl.BlockSpec((1, 1, D), lambda i: (i, 0, 0)),   # per-tile sum(x^2)
        ),
        out_shape=(
            jax.ShapeDtypeStruct((B, O), jnp.float32),
            jax.ShapeDtypeStruct((num_tiles, 1, D), jnp.float32),
            jax.ShapeDtypeStruct((num_tiles, 1, D), jnp.float32),
        ),
        compiler_params=pltpu.CompilerParams(
            dimension_semantics=("parallel",),              # batch axis sharded across TCs
            vmem_limit_bytes=vmem_limit,
        ),
        cost_estimate=cost,
    )(xf, w1_eff, b1_eff, w2, b2)

    # ---- running-buffer update (matches CustomBN's torch.no_grad() block) ----
    bmean = (jnp.sum(psum, axis=(0, 1)) / B).reshape(1, D)
    bsqmean = (jnp.sum(psq, axis=(0, 1)) / B).reshape(1, D)
    count = state["count"]                                  # int32 scalar (exact)
    countf = count.astype(jnp.float32)
    new_countf = countf + B
    new_state = {
        "count": count + jnp.int32(B),
        "mean": (state["mean"] * countf + B * bmean) / new_countf,
        "sq_mean": (state["sq_mean"] * countf + B * bsqmean) / new_countf,
    }
    return out, new_state


def init_params(key, in_dim, hidden, out_dim):
    """Deterministic init mimicking PyTorch Linear default: U(-1/sqrt(fan_in), 1/sqrt(fan_in))."""
    k1, k2, k3, k4 = jax.random.split(key, 4)
    lim1 = 1.0 / jnp.sqrt(in_dim)
    lim2 = 1.0 / jnp.sqrt(hidden)
    return {
        "w1": jax.random.uniform(k1, (in_dim, hidden), jnp.float32, -lim1, lim1),
        "b1": jax.random.uniform(k2, (1, hidden), jnp.float32, -lim1, lim1),
        "w2": jax.random.uniform(k3, (hidden, out_dim), jnp.float32, -lim2, lim2),
        "b2": jax.random.uniform(k4, (1, out_dim), jnp.float32, -lim2, lim2),
    }


def init_state(in_dim):
    # CustomBN buffers: _count = 0, _mean = zeros, _squared_mean = ones
    return {
        "count": jnp.zeros((), jnp.int32),
        "mean": jnp.zeros((1, in_dim), jnp.float32),
        "sq_mean": jnp.ones((1, in_dim), jnp.float32),
    }


def _reference_forward(x, state, params):
    std = jnp.sqrt(jnp.maximum(state["sq_mean"] - state["mean"] ** 2, EPS_CLAMP))
    xn = (x - state["mean"]) / std
    h = jnp.maximum(xn @ params["w1"] + params["b1"], 0.0)
    return h @ params["w2"] + params["b2"]


if __name__ == "__main__":
    B, D, H, O = 8, 16, 32, 8   # batch, state-features, hidden, output

    key = jax.random.PRNGKey(0)
    kx1, kx2, kx3, kp = jax.random.split(key, 4)
    x1 = jax.random.normal(kx1, (B, D), jnp.float32)
    x2 = 0.5 * jax.random.normal(kx2, (B, D), jnp.float32) + 0.3
    params = init_params(kp, D, H, O)
    state0 = init_state(D)

    fwd = jax.jit(normalized_mlp_forward)

    # Two consecutive calls exercise both the normalization and the running-stat update.
    out1, state1 = fwd(x1, state0, params)
    out2, state2 = fwd(x2, state1, params)
    jax.block_until_ready((out1, out2, state2))

    # Outputs vs pure-f32 reference (kernel uses bf16 MXU operands -> loose tolerance).
    ref1 = _reference_forward(x1, state0, params)
    ref2 = _reference_forward(x2, state1, params)
    assert out1.shape == (B, O) and out2.shape == (B, O)
    assert jnp.allclose(out1, ref1, atol=5e-2, rtol=5e-2)
    assert jnp.allclose(out2, ref2, atol=5e-2, rtol=5e-2)

    # Running-buffer update is exact f32 math: after the first call (count was 0) the
    # buffers must equal the batch statistics of the unnormalized input.
    assert jnp.allclose(state1["mean"], x1.mean(axis=0, keepdims=True), atol=1e-5)
    assert jnp.allclose(state1["sq_mean"], (x1 ** 2).mean(axis=0, keepdims=True), atol=1e-5)
    assert int(state1["count"]) == B
    # After the second call: weighted running average with count = B.
    exp_mean = (state1["mean"] * B + B * x2.mean(axis=0, keepdims=True)) / (2 * B)
    assert jnp.allclose(state2["mean"], exp_mean, atol=1e-5)

    # Partial-tile path: a batch that does not divide the tile exercises the in-kernel
    # row mask (here TM=16, grid=2, last tile has 4 valid rows).
    B3 = 20
    x3 = jax.random.normal(kx3, (B3, D), jnp.float32)
    out3, state3 = jax.block_until_ready(
        jax.jit(functools.partial(normalized_mlp_forward, batch_tile=16))(x3, state0, params))
    ref3 = _reference_forward(x3, state0, params)
    assert out3.shape == (B3, O)
    assert jnp.allclose(out3, ref3, atol=5e-2, rtol=5e-2)
    assert jnp.allclose(state3["mean"], x3.mean(axis=0, keepdims=True), atol=1e-5)
    assert jnp.allclose(state3["sq_mean"], (x3 ** 2).mean(axis=0, keepdims=True), atol=1e-5)
    assert int(state3["count"]) == B3

    print("KERNEL_OK")
</pallas_src>

<mosaic_0001>
module attributes {stable_mosaic.version = 11 : i64} {
  func.func @_mlp_stats_kernel(%arg0: i32, %arg1: memref<8x16xf32, #tpu.memory_space<vmem>>, %arg2: memref<16x32xbf16, #tpu.memory_space<vmem>>, %arg3: memref<1x32xf32, #tpu.memory_space<vmem>>, %arg4: memref<32x8xbf16, #tpu.memory_space<vmem>>, %arg5: memref<1x8xf32, #tpu.memory_space<vmem>>, %arg6: memref<8x8xf32, #tpu.memory_space<vmem>>, %arg7: memref<1x1x16xf32, #tpu.memory_space<vmem>>, %arg8: memref<1x1x16xf32, #tpu.memory_space<vmem>>) attributes {dimension_semantics = [#tpu.dimension_semantics<parallel>], iteration_bounds = array<i64: 1>, scalar_prefetch = 0 : i64, scratch_operands = 0 : i64, tpu.core_type = #tpu.core_type<tc>, window_params = [{transform_indices = @transform_0, window_bounds = array<i64: 8, 16>}, {pipeline_mode = #tpu.pipeline_mode<synchronous>, transform_indices = @transform_1, window_bounds = array<i64: 16, 32>}, {pipeline_mode = #tpu.pipeline_mode<synchronous>, transform_indices = @transform_2, window_bounds = array<i64: 1, 32>}, {pipeline_mode = #tpu.pipeline_mode<synchronous>, transform_indices = @transform_3, window_bounds = array<i64: 32, 8>}, {pipeline_mode = #tpu.pipeline_mode<synchronous>, transform_indices = @transform_4, window_bounds = array<i64: 1, 8>}, {transform_indices = @transform_5, window_bounds = array<i64: 8, 8>}, {transform_indices = @transform_6, window_bounds = array<i64: 1, 1, 16>}, {transform_indices = @transform_7, window_bounds = array<i64: 1, 1, 16>}]} {
    %c0 = arith.constant 0 : index
    %c0_0 = arith.constant 0 : index
    %0 = vector.load %arg1[%c0, %c0_0] : memref<8x16xf32, #tpu.memory_space<vmem>>, vector<8x16xf32>
    %1 = arith.truncf %0 : vector<8x16xf32> to vector<8x16xbf16>
    %c0_1 = arith.constant 0 : index
    %c0_2 = arith.constant 0 : index
    %2 = vector.load %arg2[%c0_1, %c0_2] : memref<16x32xbf16, #tpu.memory_space<vmem>>, vector<16x32xbf16>
    %cst = arith.constant dense<0.000000e+00> : vector<8x32xf32>
    %3 = tpu.matmul %1, %2, %cst {dimension_numbers = #tpu.dot_dimension_numbers<[1], [0], [0], [1], [0, 0, 1, 1], [], []>} : vector<8x16xbf16>, vector<16x32xbf16>, vector<8x32xf32> -> vector<8x32xf32>
    %c0_3 = arith.constant 0 : index
    %c0_4 = arith.constant 0 : index
    %4 = vector.load %arg3[%c0_3, %c0_4] : memref<1x32xf32, #tpu.memory_space<vmem>>, vector<1x32xf32>
    %5 = vector.broadcast %4 : vector<1x32xf32> to vector<8x32xf32>
    %6 = arith.addf %3, %5 : vector<8x32xf32>
    %cst_5 = arith.constant 0.000000e+00 : f32
    %7 = vector.broadcast %cst_5 : f32 to vector<8x32xf32>
    %8 = arith.maximumf %6, %7 : vector<8x32xf32>
    %9 = arith.truncf %8 : vector<8x32xf32> to vector<8x32xbf16>
    %c0_6 = arith.constant 0 : index
    %c0_7 = arith.constant 0 : index
    %10 = vector.load %arg4[%c0_6, %c0_7] : memref<32x8xbf16, #tpu.memory_space<vmem>>, vector<32x8xbf16>
    %cst_8 = arith.constant dense<0.000000e+00> : vector<8x8xf32>
    %11 = tpu.matmul %9, %10, %cst_8 {dimension_numbers = #tpu.dot_dimension_numbers<[1], [0], [0], [1], [0, 0, 1, 1], [], []>} : vector<8x32xbf16>, vector<32x8xbf16>, vector<8x8xf32> -> vector<8x8xf32>
    %c0_9 = arith.constant 0 : index
    %c0_10 = arith.constant 0 : index
    %12 = vector.load %arg5[%c0_9, %c0_10] : memref<1x8xf32, #tpu.memory_space<vmem>>, vector<1x8xf32>
    %13 = vector.broadcast %12 : vector<1x8xf32> to vector<8x8xf32>
    %14 = arith.addf %11, %13 : vector<8x8xf32>
    %c0_11 = arith.constant 0 : index
    %c0_12 = arith.constant 0 : index
    %15 = vector.load %arg6[%c0_11, %c0_12] : memref<8x8xf32, #tpu.memory_space<vmem>>, vector<8x8xf32>
    tpu.vector_store %arg6[%c0_11, %c0_12], %14 {strides = array<i32>} : memref<8x8xf32, #tpu.memory_space<vmem>>, vector<8x8xf32>,
    %cst_13 = arith.constant dense<0.000000e+00> : vector<16xf32>
    %16 = vector.multi_reduction <add>, %0, %cst_13 [0] : vector<8x16xf32> to vector<16xf32>
    %17 = vector.shape_cast %16 : vector<16xf32> to vector<1x16xf32>
    %18 = vector.shape_cast %17 : vector<1x16xf32> to vector<1x1x16xf32>
    %c0_14 = arith.constant 0 : index
    %c0_15 = arith.constant 0 : index
    %c0_16 = arith.constant 0 : index
    %19 = vector.load %arg7[%c0_14, %c0_15, %c0_16] : memref<1x1x16xf32, #tpu.memory_space<vmem>>, vector<1x1x16xf32>
    tpu.vector_store %arg7[%c0_14, %c0_15, %c0_16], %18 {strides = array<i32>} : memref<1x1x16xf32, #tpu.memory_space<vmem>>, vector<1x1x16xf32>,
    %20 = arith.mulf %0, %0 : vector<8x16xf32>
    %cst_17 = arith.constant dense<0.000000e+00> : vector<16xf32>
    %21 = vector.multi_reduction <add>, %20, %cst_17 [0] : vector<8x16xf32> to vector<16xf32>
    %22 = vector.shape_cast %21 : vector<16xf32> to vector<1x16xf32>
    %23 = vector.shape_cast %22 : vector<1x16xf32> to vector<1x1x16xf32>
    %c0_18 = arith.constant 0 : index
    %c0_19 = arith.constant 0 : index
    %c0_20 = arith.constant 0 : index
    %24 = vector.load %arg8[%c0_18, %c0_19, %c0_20] : memref<1x1x16xf32, #tpu.memory_space<vmem>>, vector<1x1x16xf32>
    tpu.vector_store %arg8[%c0_18, %c0_19, %c0_20], %23 {strides = array<i32>} : memref<1x1x16xf32, #tpu.memory_space<vmem>>, vector<1x1x16xf32>,
    return
  }
  func.func @transform_0(%arg0: i32) -> (i32, i32) {
    %c0_i32 = arith.constant 0 : i32
    %c0_i32_0 = arith.constant 0 : i32
    return %arg0, %c0_i32 : i32, i32
  }
  func.func @transform_1(%arg0: i32) -> (i32, i32) {
    %c0_i32 = arith.constant 0 : i32
    %c0_i32_0 = arith.constant 0 : i32
    %c0_i32_1 = arith.constant 0 : i32
    return %c0_i32, %c0_i32_0 : i32, i32
  }
  func.func @transform_2(%arg0: i32) -> (i32, i32) {
    %c0_i32 = arith.constant 0 : i32
    %c0_i32_0 = arith.constant 0 : i32
    %c0_i32_1 = arith.constant 0 : i32
    return %c0_i32, %c0_i32_0 : i32, i32
  }
  func.func @transform_3(%arg0: i32) -> (i32, i32) {
    %c0_i32 = arith.constant 0 : i32
    %c0_i32_0 = arith.constant 0 : i32
    %c0_i32_1 = arith.constant 0 : i32
    return %c0_i32, %c0_i32_0 : i32, i32
  }
  func.func @transform_4(%arg0: i32) -> (i32, i32) {
    %c0_i32 = arith.constant 0 : i32
    %c0_i32_0 = arith.constant 0 : i32
    %c0_i32_1 = arith.constant 0 : i32
    return %c0_i32, %c0_i32_0 : i32, i32
  }
  func.func @transform_5(%arg0: i32) -> (i32, i32) {
    %c0_i32 = arith.constant 0 : i32
    %c0_i32_0 = arith.constant 0 : i32
    return %arg0, %c0_i32 : i32, i32
  }
  func.func @transform_6(%arg0: i32) -> (i32, i32, i32) {
    %c0_i32 = arith.constant 0 : i32
    %c0_i32_0 = arith.constant 0 : i32
    %c0_i32_1 = arith.constant 0 : i32
    return %arg0, %c0_i32, %c0_i32_0 : i32, i32, i32
  }
  func.func @transform_7(%arg0: i32) -> (i32, i32, i32) {
    %c0_i32 = arith.constant 0 : i32
    %c0_i32_0 = arith.constant 0 : i32
    %c0_i32_1 = arith.constant 0 : i32
    return %arg0, %c0_i32, %c0_i32_0 : i32, i32, i32
  }
}

</mosaic_0001>

<bundles_post_ra>
// kernel: normalized_mlp_forward.1
= control target key start
LH: loop header
LB: loop body
LE: loop exit
PB: predicated region body
PF: predicated region fallthrough
CT: control target
= control target key end

     0   :  { %v253_v1 = vmov 0.0   ;;  %vm42_vm0 = vcmask 130048   ;;  %vm254_vm1 = vmmov 0   ;;  %s332_s0 = inlined_call_operand.vmem [shape: f32[8,16], index: 0, kind: input, shape index: {}]   ;;  %s333_s1 = inlined_call_operand.vmem [shape: bf16[16,32], index: 1, kind: input, shape index: {}]   ;;  %s334_s2 = inlined_call_operand.vmem [shape: f32[1,32], index: 2, kind: input, shape index: {}]   ;;  %s335_s3 = inlined_call_operand.vmem [shape: bf16[32,8], index: 3, kind: input, shape index: {}]   ;;  %s336_s4 = inlined_call_operand.vmem [shape: f32[1,8], index: 4, kind: input, shape index: {}]   ;;  %s337_s5 = inlined_call_operand.hbm [shape: f32[8,8], index: 5, kind: output, shape index: {0}]   ;;  %s338_s6 = inlined_call_operand.vmem [shape: f32[1,1,16], index: 6, kind: output, shape index: {1}]   ;;  %s339_s7 = inlined_call_operand.vmem [shape: f32[1,1,16], index: 7, kind: output, shape index: {2}]  }
   0x1   :  { %v226_v0 = vld [vmem:[%s333_s1] sm:$0xff]   ;;  %209 = vmatprep.subr.bf16.mxu0 %v253_v1  ;;  %215 = vmatprep.subr.bf16.mxu1 %v253_v1 }
   0x2   :  { %v25_v2 = vld [vmem:[%s332_s0] sm:$0xff]  ;;  %210 = vmatpush3.bf16.msra.mxu0 %v226_v0  ;;  %211 = vmatprep.mubr.msk.bf16.mxu0 %vm254_vm1, %v253_v1 }
   0x3   :  { %v26_v3 = vpack.c.bf16 %v25_v2, %v25_v2  ;;  %v157_v4 = vsel %vm42_vm0, %v25_v2, 0.0  ;;  %v166_v5 = vmul.f32 %v25_v2, %v25_v2  ;;  %219 = vmatprep.mubr.msk.bf16.mxu1 %vm254_vm1, %v253_v1 }
   0x4   :  { %v158_v6 = vrot.slane %v157_v4, 4 }
   0x5   :  { %v167_v7 = vsel %vm42_vm0, %v166_v5, 0.0 }
   0x6   :  { %13 = vsyncpa [#allocation3], 0  ;;  %212 = vmatmul.mubr.msk.bf16.vlgmr.msra.gmra.mrb[0].mxu0 %vm42_vm0, %v26_v3  ;;  %v159_v8 = vadd.f32 %v158_v6, %v157_v4  ;;  %v168_v9 = vrot.slane %v167_v7, 4  ;;  %vm164_vm2 = vcmask 122880   ;;  %v227_v19 = vld [vmem:[%s335_s3] sm:$0xff]   ;;  %v228_v20 = vld [vmem:[%s335_s3 + $0x8] sm:$0xff]  }
   0x7   :  { %216 = vmatpush3.bf16.msra.mxu1 %v227_v19  ;;  %v197_v21 = vld [vmem:[%s334_s2] ss:$0 sm:$0xff]  ;;  %vm111_vm3 = vcmask 261120   ;;  %s255_s13 = smov [#allocation2]   ;;  %vm155_vm4 = vcmask 64512  }
   0x8   :  { %v160_v10 = vrot.slane %v159_v8, 2  ;;  %v169_v11 = vadd.f32 %v168_v9, %v167_v7  ;;  %217 = vmatprep.subr.bf16.mxu1 %v253_v1  ;;  %v200_v29 = vld [vmem:[%s336_s4] ss:$0 sm:$0xff]  ;;  %s181_s3 = sshll.u32 %s255_s13, 4  ;;  %s182_s3 = int_to_ptr.vmem [resolvable:$true] %s181_s3 }
   0x9   :  { %s229_s2 = scalar_lea.vmem %s182_s3, 128  ;;  %p234_p1 = scmp.lt.s32.totalorder %s182_s3, %s182_s3 }
   0xa   :  { %v161_v12 = vadd.f32 %v160_v10, %v159_v8  ;;  %v170_v13 = vrot.slane %v169_v11, 2  ;;  %p230_p0 = scmp.ne.s32.totalorder %s182_s3, %s229_s2  ;;  %p235_p2 = scmp.lt.s32.totalorder %s229_s2, %s229_s2 }
   0xb   :  { %218 = vmatpush3.bf16.msra.mxu1 %v228_v20 }
   0xc   :  { %v162_v14 = vrot.slane %v161_v12, 1  ;;  %v171_v15 = vadd.f32 %v170_v13, %v169_v11  ;;  %p236_p3 = por %p235_p2, %p234_p1 }
   0xe   :  { %v163_v16 = vadd.f32 %v162_v14, %v161_v12  ;;  %v172_v17 = vrot.slane %v171_v15, 1  ;;  %p237_p4 = pnand %p236_p3, %p230_p0 }
  0x10   :  { %165 = vst.msk [vmem:[%s338_s6] sm:$0x1] %vm164_vm2, %v163_v16  ;;  %v173_v18 = vadd.f32 %v172_v17, %v171_v15 }
  0x12   :  { %174 = vst.msk [vmem:[%s339_s7] sm:$0x1] %vm164_vm2, %v173_v18 }
  0xd9   :  { %v80_v22 = vpop.f32.mrb[0].mxu0 }
  0xda   :  { %v81_v23 = vadd.f32 %v197_v21, %v80_v22  ;;  %v213_v24 = vpop.f32.mrb[1].mxu0 }
  0xdb   :  { %v83_v25 = vpop.f32.mrb[2].mxu0 }
  0xdc   :  { %v86_v26 = vmax.f32 %v81_v23, 0.0  ;;  %v214_v27 = vpop.f32.mrb[3].mxu0 }
  0xde   :  { %v87_v28 = vpack.c.bf16 %v86_v26, %v86_v26 }
  0xe0   :  { %220 = vmatmul.mubr.msk.bf16.vlgmr.msra.gmra.mrb[0].mxu1 %vm111_vm3, %v87_v28 }
 0x1b3   :  { %v149_v30 = vpop.f32.mrb[0].mxu1 }
 0x1b4   :  { %v150_v31 = vadd.f32 %v200_v29, %v149_v30  ;;  %v221_v32 = vpop.f32.mrb[1].mxu1 }
 0x1b5   :  { %v152_v33 = vpop.f32.mrb[2].mxu1 }
 0x1b6   :  { %v222_v34 = vpop.f32.mrb[3].mxu1  ;;  %156 = vst.msk [vmem:[#allocation2] sm:$0xff] %vm155_vm4, %v150_v31 }
 0x1b7   :  { %240 = shalt.err (!%p237_p4)
}
 0x1b8   :  { %s241_s4 = scalar_lea.hbm %s337_s5, 128 }
 0x1b9   :  { %p242_p5 = scmp.ne.s32.totalorder %s337_s5, %s241_s4  ;;  %p245_p6 = scmp.lt.u32.totalorder %s241_s4, %s337_s5 }
 0x1bb   :  { %p247_p7 = pnand %p245_p6, %p242_p5 }
 0x1bd   :  { %250 = shalt.err (!%p247_p7)
}
 0x1be   :  { %184 = dma.vmem_to_hbm [thread:$0]  %s182_s3, 128, %s337_s5, [#allocation3]  }
 0x1bf   :  { %251 = dma.done.wait [#allocation3], 128  }
 0x1c0   :  { %252 = vsyncadd [#allocation3], 4294967168 }
 0x1c1   :  { %196 = vsyncpa [#allocation3], 1 }

</bundles_post_ra>
